<compile_context>
chip_gen: v7x
topology: tpu7x:2x2x1
jax: 0.10.0
libtpu: 0.0.40
codegen_flags: <defaults>
</compile_context>

<pallas_src>
import jax
import jax.numpy as jnp
from jax.experimental import pallas as pl
from jax.experimental.pallas import tpu as pltpu

_LANE = 128
_SUBLANE_BF16 = 16


def _round_up(v, m):
    return ((v + m - 1) // m) * m


def _sage2_kernel(a_ref, x_ref, w1_ref, b1_ref, w2_ref, b2_ref, o_ref):
    a = a_ref[...]                                   # [Np, Np]   bf16 row-normalized adjacency
    x = x_ref[...]                                   # [Np, INp]  bf16 node features (lane-padded)

    # ---- layer 1: SAGEConv(in -> hid), mean aggregator, fused self/neigh projection ----
    neigh1 = jnp.dot(a, x, preferred_element_type=jnp.float32).astype(jnp.bfloat16)   # A_mean @ X
    z1 = jnp.concatenate([x, neigh1], axis=-1)       # [Np, 2*INp]  (tile-aligned lane concat)
    h = jnp.dot(z1, w1_ref[...], preferred_element_type=jnp.float32) + b1_ref[...]    # [Np, HIDp] f32
    h = jnp.maximum(h, 0.0).astype(jnp.bfloat16)     # ReLU, back to bf16 for the MXU

    # ---- layer 2: SAGEConv(hid -> out), mean aggregator, fused self/neigh projection ----
    neigh2 = jnp.dot(a, h, preferred_element_type=jnp.float32).astype(jnp.bfloat16)
    z2 = jnp.concatenate([h, neigh2], axis=-1)       # [Np, 2*HIDp]
    out = jnp.dot(z2, w2_ref[...], preferred_element_type=jnp.float32) + b2_ref[...]  # [Np, OUTp] f32

    o_ref[...] = out.astype(o_ref.dtype)             # lane-dense (128-wide) unmasked store


def sage_simple_forward(a_mean, x, params):
    """Fused 2-layer SAGE forward in one pallas_call (bf16 MXU path, f32 accumulation)."""
    ws1, wn1, b1, ws2, wn2, b2 = params
    n, in_feats = x.shape
    hid = ws1.shape[1]
    out_feats = ws2.shape[1]

    n_p = _round_up(n, _SUBLANE_BF16)
    in_p = _round_up(in_feats, _LANE)
    hid_p = _round_up(hid, _LANE)
    out_p = _round_up(out_feats, _LANE)

    bf = jnp.bfloat16
    # Zero-padded, bf16 inputs (padded rows/cols contribute exact zeros).
    a_p = jnp.zeros((n_p, n_p), bf).at[:n, :n].set(a_mean.astype(bf))
    x_p = jnp.zeros((n_p, in_p), bf).at[:n, :in_feats].set(x.astype(bf))

    # Fused layer-1 weight: rows [0:INp) = W_self, rows [INp:2*INp) = W_neigh.
    w1f = jnp.zeros((2 * in_p, hid_p), bf)
    w1f = w1f.at[:in_feats, :hid].set(ws1.astype(bf))
    w1f = w1f.at[in_p:in_p + in_feats, :hid].set(wn1.astype(bf))
    b1p = jnp.zeros((1, hid_p), jnp.float32).at[:, :hid].set(b1)

    # Fused layer-2 weight: rows [0:HIDp) = W_self, rows [HIDp:2*HIDp) = W_neigh.
    w2f = jnp.zeros((2 * hid_p, out_p), bf)
    w2f = w2f.at[:hid, :out_feats].set(ws2.astype(bf))
    w2f = w2f.at[hid_p:hid_p + hid, :out_feats].set(wn2.astype(bf))
    b2p = jnp.zeros((1, out_p), jnp.float32).at[:, :out_feats].set(b2)

    vmem = pl.BlockSpec(memory_space=pltpu.MemorySpace.VMEM)
    out_padded = pl.pallas_call(
        _sage2_kernel,
        out_shape=jax.ShapeDtypeStruct((n_p, out_p), jnp.float32),
        in_specs=[vmem] * 6,
        out_specs=vmem,
    )(a_p, x_p, w1f, b1p, w2f, b2p)
    return out_padded[:n, :out_feats]


def sage_simple_reference(a_mean, x, params):
    """Pure-JAX f32 reference (the module semantics)."""
    ws1, wn1, b1, ws2, wn2, b2 = params
    h = x @ ws1 + (a_mean @ x) @ wn1 + b1
    h = jnp.maximum(h, 0.0)
    return h @ ws2 + (a_mean @ h) @ wn2 + b2


def sage_simple_reference_bf16(a_mean, x, params):
    """Reference that mirrors the kernel's bf16 casts (tight numerical check)."""
    bf = jnp.bfloat16
    ws1, wn1, b1, ws2, wn2, b2 = params
    a = a_mean.astype(bf)
    xb = x.astype(bf)
    n1 = jnp.dot(a, xb, preferred_element_type=jnp.float32).astype(bf)
    h = (jnp.dot(xb, ws1.astype(bf), preferred_element_type=jnp.float32)
         + jnp.dot(n1, wn1.astype(bf), preferred_element_type=jnp.float32) + b1)
    h = jnp.maximum(h, 0.0).astype(bf)
    n2 = jnp.dot(a, h, preferred_element_type=jnp.float32).astype(bf)
    return (jnp.dot(h, ws2.astype(bf), preferred_element_type=jnp.float32)
            + jnp.dot(n2, wn2.astype(bf), preferred_element_type=jnp.float32) + b2)


def make_mean_adjacency(n, key):
    """Deterministic random digraph -> dense row-normalized (mean) adjacency."""
    adj = (jax.random.uniform(key, (n, n)) < 0.3).astype(jnp.float32)
    adj = adj * (1.0 - jnp.eye(n, dtype=jnp.float32))   # no self loops
    deg = jnp.sum(adj, axis=1, keepdims=True)            # in-degree per dst node
    inv_deg = jnp.where(deg > 0, 1.0 / jnp.maximum(deg, 1.0), 0.0)
    return adj * inv_deg                                  # zero rows for isolated dst nodes


if __name__ == "__main__":
    # Small shapes consistent with the module: N nodes, in -> hid -> out widths.
    N, IN_FEATS, HID_FEATS, OUT_FEATS = 16, 8, 32, 16

    key = jax.random.PRNGKey(0)
    k_adj, k_x, k1, k2, k3, k4 = jax.random.split(key, 6)

    a_mean = make_mean_adjacency(N, k_adj)                        # [N, N]
    x = jax.random.normal(k_x, (N, IN_FEATS), dtype=jnp.float32)  # [N, in_feats]

    def xavier(k, fan_in, fan_out):
        limit = (6.0 / (fan_in + fan_out)) ** 0.5
        return jax.random.uniform(k, (fan_in, fan_out), jnp.float32, -limit, limit)

    ws1 = xavier(k1, IN_FEATS, HID_FEATS)
    wn1 = xavier(k2, IN_FEATS, HID_FEATS)
    b1 = jnp.zeros((1, HID_FEATS), jnp.float32)
    ws2 = xavier(k3, HID_FEATS, OUT_FEATS)
    wn2 = xavier(k4, HID_FEATS, OUT_FEATS)
    b2 = jnp.zeros((1, OUT_FEATS), jnp.float32)
    params = (ws1, wn1, b1, ws2, wn2, b2)

    out = sage_simple_forward(a_mean, x, params)
    out = jax.block_until_ready(out)
    assert out.shape == (N, OUT_FEATS)

    # Tight check vs. a reference that applies the same bf16 casts as the kernel.
    ref_bf16 = sage_simple_reference_bf16(a_mean, x, params)
    assert jnp.allclose(out, ref_bf16, atol=2e-3, rtol=2e-3), \
        "Pallas output mismatch vs bf16-mirroring reference"

    # Loose check vs. the pure-f32 module semantics (bf16 MXU path => relaxed tolerance).
    ref_f32 = sage_simple_reference(a_mean, x, params)
    assert jnp.allclose(out, ref_f32, atol=1e-1, rtol=1e-1), \
        "Pallas output mismatch vs f32 reference"

    print("KERNEL_OK")
</pallas_src>

<mosaic_0001>
module attributes {stable_mosaic.version = 11 : i64} {
  func.func @_sage2_kernel(%arg0: memref<16x16xbf16, #tpu.memory_space<vmem>>, %arg1: memref<16x128xbf16, #tpu.memory_space<vmem>>, %arg2: memref<256x128xbf16, #tpu.memory_space<vmem>>, %arg3: memref<1x128xf32, #tpu.memory_space<vmem>>, %arg4: memref<256x128xbf16, #tpu.memory_space<vmem>>, %arg5: memref<1x128xf32, #tpu.memory_space<vmem>>, %arg6: memref<16x128xf32, #tpu.memory_space<vmem>>) attributes {dimension_semantics = [], scalar_prefetch = 0 : i64, scratch_operands = 0 : i64, tpu.core_type = #tpu.core_type<tc>} {
    %c0 = arith.constant 0 : index
    %c0_0 = arith.constant 0 : index
    %0 = vector.load %arg0[%c0, %c0_0] : memref<16x16xbf16, #tpu.memory_space<vmem>>, vector<16x16xbf16>
    %c0_1 = arith.constant 0 : index
    %c0_2 = arith.constant 0 : index
    %1 = vector.load %arg1[%c0_1, %c0_2] : memref<16x128xbf16, #tpu.memory_space<vmem>>, vector<16x128xbf16>
    %cst = arith.constant dense<0.000000e+00> : vector<16x128xf32>
    %2 = tpu.matmul %0, %1, %cst {dimension_numbers = #tpu.dot_dimension_numbers<[1], [0], [0], [1], [0, 0, 1, 1], [], []>} : vector<16x16xbf16>, vector<16x128xbf16>, vector<16x128xf32> -> vector<16x128xf32>
    %3 = arith.truncf %2 : vector<16x128xf32> to vector<16x128xbf16>
    %4 = tpu.concatenate %1, %3 in 1 : vector<16x128xbf16>, vector<16x128xbf16> -> vector<16x256xbf16>
    %c0_3 = arith.constant 0 : index
    %c0_4 = arith.constant 0 : index
    %5 = vector.load %arg2[%c0_3, %c0_4] : memref<256x128xbf16, #tpu.memory_space<vmem>>, vector<256x128xbf16>
    %cst_5 = arith.constant dense<0.000000e+00> : vector<16x128xf32>
    %6 = tpu.matmul %4, %5, %cst_5 {dimension_numbers = #tpu.dot_dimension_numbers<[1], [0], [0], [1], [0, 0, 1, 1], [], []>} : vector<16x256xbf16>, vector<256x128xbf16>, vector<16x128xf32> -> vector<16x128xf32>
    %c0_6 = arith.constant 0 : index
    %c0_7 = arith.constant 0 : index
    %7 = vector.load %arg3[%c0_6, %c0_7] : memref<1x128xf32, #tpu.memory_space<vmem>>, vector<1x128xf32>
    %8 = vector.broadcast %7 : vector<1x128xf32> to vector<16x128xf32>
    %9 = arith.addf %6, %8 : vector<16x128xf32>
    %cst_8 = arith.constant 0.000000e+00 : f32
    %10 = vector.broadcast %cst_8 : f32 to vector<16x128xf32>
    %11 = arith.maximumf %9, %10 : vector<16x128xf32>
    %12 = arith.truncf %11 : vector<16x128xf32> to vector<16x128xbf16>
    %cst_9 = arith.constant dense<0.000000e+00> : vector<16x128xf32>
    %13 = tpu.matmul %0, %12, %cst_9 {dimension_numbers = #tpu.dot_dimension_numbers<[1], [0], [0], [1], [0, 0, 1, 1], [], []>} : vector<16x16xbf16>, vector<16x128xbf16>, vector<16x128xf32> -> vector<16x128xf32>
    %14 = arith.truncf %13 : vector<16x128xf32> to vector<16x128xbf16>
    %15 = tpu.concatenate %12, %14 in 1 : vector<16x128xbf16>, vector<16x128xbf16> -> vector<16x256xbf16>
    %c0_10 = arith.constant 0 : index
    %c0_11 = arith.constant 0 : index
    %16 = vector.load %arg4[%c0_10, %c0_11] : memref<256x128xbf16, #tpu.memory_space<vmem>>, vector<256x128xbf16>
    %cst_12 = arith.constant dense<0.000000e+00> : vector<16x128xf32>
    %17 = tpu.matmul %15, %16, %cst_12 {dimension_numbers = #tpu.dot_dimension_numbers<[1], [0], [0], [1], [0, 0, 1, 1], [], []>} : vector<16x256xbf16>, vector<256x128xbf16>, vector<16x128xf32> -> vector<16x128xf32>
    %c0_13 = arith.constant 0 : index
    %c0_14 = arith.constant 0 : index
    %18 = vector.load %arg5[%c0_13, %c0_14] : memref<1x128xf32, #tpu.memory_space<vmem>>, vector<1x128xf32>
    %19 = vector.broadcast %18 : vector<1x128xf32> to vector<16x128xf32>
    %20 = arith.addf %17, %19 : vector<16x128xf32>
    %c0_15 = arith.constant 0 : index
    %c0_16 = arith.constant 0 : index
    %21 = vector.load %arg6[%c0_15, %c0_16] : memref<16x128xf32, #tpu.memory_space<vmem>>, vector<16x128xf32>
    tpu.vector_store %arg6[%c0_15, %c0_16], %20 {strides = array<i32>} : memref<16x128xf32, #tpu.memory_space<vmem>>, vector<16x128xf32>,
    return
  }
}

</mosaic_0001>

<bundles_post_ra>
// kernel: tpu_custom_call.1
= control target key start
LH: loop header
LB: loop body
LE: loop exit
PB: predicated region body
PF: predicated region fallthrough
CT: control target
= control target key end

     0   :  { %11 = vsyncpa [#allocation3], 0  ;;  %s960_s0 = inlined_call_operand.hbm [shape: bf16[16,16], index: 0, kind: input, shape index: {}]   ;;  %s961_s1 = inlined_call_operand.hbm [shape: bf16[16,128], index: 1, kind: input, shape index: {}]   ;;  %s962_s2 = inlined_call_operand.hbm [shape: bf16[256,128], index: 2, kind: input, shape index: {}]   ;;  %s963_s3 = inlined_call_operand.vmem [shape: f32[1,128], index: 3, kind: input, shape index: {}]   ;;  %s964_s4 = inlined_call_operand.hbm [shape: bf16[256,128], index: 4, kind: input, shape index: {}]   ;;  %s965_s5 = inlined_call_operand.vmem [shape: f32[1,128], index: 5, kind: input, shape index: {}]   ;;  %s966_s6 = inlined_call_operand.hbm [shape: f32[16,128], index: 6, kind: output, shape index: {}]  }
   0x1   :  { %12 = vsyncpa [#allocation6], 0 }
   0x2   :  { %13 = vsyncpa [#allocation9], 0 }
   0x3   :  { %14 = vsyncpa [#allocation4], 0  ;;  %s820_s21 = smov [#allocation5]   ;;  %s821_s23 = smov [#allocation2]  }
   0x4   :  { %s32_s22 = sshll.u32 %s820_s21, 4  ;;  %s20_s24 = sshll.u32 %s821_s23, 4  ;;  %s33_s22 = int_to_ptr.vmem [resolvable:$true] %s32_s22  ;;  %s866_s24 = int_to_ptr.vmem [resolvable:$true] %s20_s24 }
   0x5   :  { %s702_s27 = scalar_lea.hbm %s961_s1, 128 }
   0x6   :  { %p703_p0 = scmp.ne.s32.totalorder %s961_s1, %s702_s27  ;;  %p706_p1 = scmp.lt.u32.totalorder %s702_s27, %s961_s1 }
   0x8   :  { %p708_p2 = pnand %p706_p1, %p703_p0 }
   0xa   :  { %711 = shalt.err (!%p708_p2)
}
   0xb   :  { %s712_s8 = scalar_lea.vmem %s33_s22, 128  ;;  %p717_p4 = scmp.lt.s32.totalorder %s33_s22, %s33_s22 }
   0xc   :  { %p713_p3 = scmp.ne.s32.totalorder %s33_s22, %s712_s8  ;;  %p718_p5 = scmp.lt.s32.totalorder %s712_s8, %s712_s8 }
   0xe   :  { %p719_p6 = por %p718_p5, %p717_p4 }
  0x10   :  { %p720_p7 = pnand %p719_p6, %p713_p3 }
  0x12   :  { %723 = shalt.err (!%p720_p7)
}
  0x13   :  { %s822_s9 = smov 64   ;;  %s823_s10 = smov 4  }
  0x14   :  { %38 = dma.hbm_to_vmem [thread:$0]  %s961_s1, 128, %s33_s22, [#allocation6], %s822_s9, %s822_s9, %s823_s10  }
  0x15   :  { %s724_s15 = scalar_lea.hbm %s960_s0, 128 }
  0x16   :  { %p725_p8 = scmp.ne.s32.totalorder %s960_s0, %s724_s15  ;;  %p728_p9 = scmp.lt.u32.totalorder %s724_s15, %s960_s0 }
  0x18   :  { %p730_p10 = pnand %p728_p9, %p725_p8 }
  0x1a   :  { %733 = shalt.err (!%p730_p10)
}
  0x1b   :  { %s734_s20 = scalar_lea.vmem %s866_s24, 128  ;;  %p739_p12 = scmp.lt.s32.totalorder %s866_s24, %s866_s24 }
  0x1c   :  { %p735_p11 = scmp.ne.s32.totalorder %s866_s24, %s734_s20  ;;  %p740_p13 = scmp.lt.s32.totalorder %s734_s20, %s734_s20 }
  0x1e   :  { %p741_p0 = por %p740_p13, %p739_p12 }
  0x20   :  { %p742_p1 = pnand %p741_p0, %p735_p11 }
  0x22   :  { %745 = shalt.err (!%p742_p1)
}
  0x23   :  { %26 = dma.hbm_to_vmem [thread:$0]  %s960_s0, 128, %s866_s24, [#allocation3], %s822_s9, %s822_s9, %s823_s10  }
  0x24   :  { %s824_s22 = smov [#allocation7]   ;;  %s825_s25 = smov [#allocation8]  }
  0x25   :  { %s44_s23 = sshll.u32 %s824_s22, 4  ;;  %s58_s26 = sshll.u32 %s825_s25, 4  ;;  %s45_s23 = int_to_ptr.vmem [resolvable:$true] %s44_s23  ;;  %s903_s26 = int_to_ptr.vmem [resolvable:$true] %s58_s26 }
  0x26   :  { %s746_s29 = scalar_lea.hbm %s962_s2, 2048 }
  0x27   :  { %p747_p2 = scmp.ne.s32.totalorder %s962_s2, %s746_s29  ;;  %p750_p3 = scmp.lt.u32.totalorder %s746_s29, %s962_s2 }
  0x29   :  { %p752_p4 = pnand %p750_p3, %p747_p2 }
  0x2b   :  { %755 = shalt.err (!%p752_p4)
}
  0x2c   :  { %s756_s0 = scalar_lea.vmem %s45_s23, 2048  ;;  %p761_p6 = scmp.lt.s32.totalorder %s45_s23, %s45_s23 }
  0x2d   :  { %p757_p5 = scmp.ne.s32.totalorder %s45_s23, %s756_s0  ;;  %p762_p7 = scmp.lt.s32.totalorder %s756_s0, %s756_s0 }
  0x2f   :  { %p763_p8 = por %p762_p7, %p761_p6 }
  0x31   :  { %p764_p9 = pnand %p763_p8, %p757_p5 }
  0x33   :  { %767 = shalt.err (!%p764_p9)
}
  0x34   :  { %50 = dma.hbm_to_vmem [thread:$0]  %s962_s2, 2048, %s45_s23, [#allocation6], %s822_s9, %s822_s9, %s823_s10  }
  0x35   :  { %s768_s15 = scalar_lea.hbm %s964_s4, 2048 }
  0x36   :  { %p769_p10 = scmp.ne.s32.totalorder %s964_s4, %s768_s15  ;;  %p772_p11 = scmp.lt.u32.totalorder %s768_s15, %s964_s4 }
  0x38   :  { %p774_p12 = pnand %p772_p11, %p769_p10 }
  0x3a   :  { %777 = shalt.err (!%p774_p12)
}
  0x3b   :  { %s778_s20 = scalar_lea.vmem %s903_s26, 2048  ;;  %p783_p0 = scmp.lt.s32.totalorder %s903_s26, %s903_s26 }
  0x3c   :  { %p779_p13 = scmp.ne.s32.totalorder %s903_s26, %s778_s20  ;;  %p784_p1 = scmp.lt.s32.totalorder %s778_s20, %s778_s20 }
  0x3e   :  { %p785_p2 = por %p784_p1, %p783_p0 }
  0x40   :  { %p786_p3 = pnand %p785_p2, %p779_p13 }
  0x42   :  { %789 = shalt.err (!%p786_p3)
}
  0x43   :  { %64 = dma.hbm_to_vmem [thread:$0]  %s964_s4, 2048, %s903_s26, [#allocation9], %s822_s9, %s822_s9, %s823_s10  }
  0x44   :  { %812 = dma.done.wait [#allocation3], 128  }
  0x45   :  { %813 = vsyncadd [#allocation3], 4294967168 }
  0x46   :  { %814 = dma.done.wait [#allocation6], 2176  }
  0x47   :  { %815 = vsyncadd [#allocation6], 4294965120 }
  0x48   :  { %816 = dma.done.wait [#allocation9], 2048  }
  0x49   :  { %817 = vsyncadd [#allocation9], 4294965248  ;;  %v826_v0 = vmov 0.0   ;;  %vm827_vm0 = vmmov 0   ;;  %v668_v1 = vld [vmem:[#allocation5] sm:$0xff]   ;;  %v669_v2 = vld [vmem:[#allocation2] sm:$0xff]  }
  0x4a   :  { %645 = vmatprep.subr.bf16.mxu1 %v826_v0  ;;  %647 = vmatprep.mubr.msk.bf16.mxu1 %vm827_vm0, %v826_v0  ;;  %vm95_vm1 = vcmask 130048   ;;  %v670_v3 = vld [vmem:[#allocation7 + $0x40] sm:$0xff]   ;;  %v672_v5 = vld [vmem:[#allocation7 + $0x48] sm:$0xff]   ;;  %v674_v7 = vld [vmem:[#allocation7 + $0x50] sm:$0xff]   ;;  %s828_s21 = smov [#allocation10]  }
  0x4b   :  { %651 = vmatprep.subr.bf16.mxu0 %v826_v0  ;;  %653 = vmatprep.mubr.msk.bf16.mxu0 %vm827_vm0, %v826_v0  ;;  %v671_v4 = vld [vmem:[#allocation7] sm:$0xff]   ;;  %v673_v6 = vld [vmem:[#allocation7 + $0x8] sm:$0xff]   ;;  %v675_v8 = vld [vmem:[#allocation7 + $0x10] sm:$0xff]   ;;  %s545_s22 = sshll.u32 %s828_s21, 4  ;;  %s546_s22 = int_to_ptr.vmem [resolvable:$true] %s545_s22 }
  0x4c   :  { %646 = vmatpush3.bf16.msra.mxu1 %v668_v1  ;;  %v676_v9 = vld [vmem:[#allocation7 + $0x58] sm:$0xff]   ;;  %v678_v11 = vld [vmem:[#allocation7 + $0x60] sm:$0xff]   ;;  %v680_v13 = vld [vmem:[#allocation7 + $0x68] sm:$0xff]   ;;  %s790_s23 = scalar_lea.vmem %s546_s22, 256  ;;  %p795_p5 = scmp.lt.s32.totalorder %s546_s22, %s546_s22 }
  0x4d   :  { %599 = vmatprep.subr.bf16.mxu1 %v670_v3  ;;  %v677_v10 = vld [vmem:[#allocation7 + $0x18] sm:$0xff]   ;;  %v679_v12 = vld [vmem:[#allocation7 + $0x20] sm:$0xff]   ;;  %v681_v14 = vld [vmem:[#allocation7 + $0x28] sm:$0xff]   ;;  %p791_p4 = scmp.ne.s32.totalorder %s546_s22, %s790_s23  ;;  %p796_p6 = scmp.lt.s32.totalorder %s790_s23, %s790_s23 }
  0x4e   :  { %v682_v15 = vld [vmem:[#allocation7 + $0x70] sm:$0xff]   ;;  %v684_v17 = vld [vmem:[#allocation7 + $0x78] sm:$0xff]   ;;  %v686_v35 = vld [vmem:[#allocation8 + $0x40] sm:$0xff]  }
  0x4f   :  { %648 = vmatmul.mubr.msk.bf16.vlgmr.msra.gmra.mrb[0].mxu1 %vm95_vm1, %v669_v2  ;;  %v683_v16 = vld [vmem:[#allocation7 + $0x30] sm:$0xff]   ;;  %v685_v18 = vld [vmem:[#allocation7 + $0x38] sm:$0xff]   ;;  %v687_v37 = vld [vmem:[#allocation8] sm:$0xff]   ;;  %p797_p7 = por %p796_p6, %p795_p5 }
  0x50   :  { %600 = vmatpush3.bf16.msra.mxu1 %v671_v4  ;;  %v562_v25 = vld [vmem:[%s963_s3] ss:$0 sm:$0xff]  ;;  %v688_v38 = vld [vmem:[#allocation8 + $0x48] sm:$0xff]   ;;  %v692_v42 = vld [vmem:[#allocation8 + $0x58] sm:$0xff]  }
  0x51   :  { %601 = vmatprep.subr.bf16.mxu1 %v672_v5  ;;  %v689_v39 = vld [vmem:[#allocation8 + $0x8] sm:$0xff]   ;;  %v690_v40 = vld [vmem:[#allocation8 + $0x50] sm:$0xff]   ;;  %v693_v43 = vld [vmem:[#allocation8 + $0x18] sm:$0xff]   ;;  %p798_p8 = pnand %p797_p7, %p791_p4 }
  0x52   :  { %v691_v41 = vld [vmem:[#allocation8 + $0x10] sm:$0xff]   ;;  %v694_v44 = vld [vmem:[#allocation8 + $0x60] sm:$0xff]   ;;  %v696_v46 = vld [vmem:[#allocation8 + $0x68] sm:$0xff]  }
  0x53   :  { %v695_v45 = vld [vmem:[#allocation8 + $0x20] sm:$0xff]   ;;  %v697_v47 = vld [vmem:[#allocation8 + $0x28] sm:$0xff]   ;;  %v698_v48 = vld [vmem:[#allocation8 + $0x70] sm:$0xff]  }
  0x54   :  { %602 = vmatpush3.bf16.msra.mxu1 %v673_v6  ;;  %v699_v49 = vld [vmem:[#allocation8 + $0x30] sm:$0xff]   ;;  %v700_v50 = vld [vmem:[#allocation8 + $0x78] sm:$0xff]  }
  0x55   :  { %603 = vmatprep.subr.bf16.mxu1 %v674_v7  ;;  %v701_v51 = vld [vmem:[#allocation8 + $0x38] sm:$0xff]   ;;  %v580_v58 = vld [vmem:[%s965_s5] ss:$0 sm:$0xff] }
  0x58   :  { %604 = vmatpush3.bf16.msra.mxu1 %v675_v8 }
  0x59   :  { %605 = vmatprep.subr.bf16.mxu1 %v676_v9 }
  0x5c   :  { %606 = vmatpush3.bf16.msra.mxu1 %v677_v10 }
  0x5d   :  { %607 = vmatprep.subr.bf16.mxu1 %v678_v11 }
  0x60   :  { %608 = vmatpush3.bf16.msra.mxu1 %v679_v12 }
  0x61   :  { %609 = vmatprep.subr.bf16.mxu1 %v680_v13 }
  0x64   :  { %610 = vmatpush3.bf16.msra.mxu1 %v681_v14 }
  0x65   :  { %611 = vmatprep.subr.bf16.mxu1 %v682_v15 }
  0x68   :  { %612 = vmatpush3.bf16.msra.mxu1 %v683_v16 }
  0x69   :  { %613 = vmatprep.subr.bf16.mxu1 %v684_v17 }
  0x6c   :  { %614 = vmatpush3.bf16.msra.mxu1 %v685_v18 }
 0x122   :  { %v133_v19 = vpop.f32.mrb[0].mxu1 }
 0x123   :  { %v649_v20 = vpop.f32.mrb[1].mxu1 }
 0x124   :  { %v136_v21 = vpop.f32.mrb[2].mxu1 }
 0x125   :  { %v140_v22 = vpack.c.bf16 %v136_v21, %v133_v19  ;;  %v650_v23 = vpop.f32.mrb[3].mxu1 }
 0x127   :  { %308 = vmatprep.mubr.bf16.mxu1 %v140_v22 }
 0x128   :  { %309 = vmatmul.mubr.bf16.vlgmr.msra.gmra.mrb[4].mxu1 %v668_v1 }
 0x1fb   :  { %v615_v24 = vpop.f32.mrb[4].mxu1 }
 0x1fc   :  { %v616_v26 = vpop.f32.mrb[5].mxu1 }
 0x1fd   :  { %v617_v27 = vadd.f32 %v616_v26, %v615_v24  ;;  %v618_v28 = vpop.f32.mrb[6].mxu1 }
 0x1fe   :  { %v619_v29 = vpop.f32.mrb[7].mxu1 }
 0x1ff   :  { %v311_v30 = vadd.f32 %v617_v27, %v562_v25  ;;  %v620_v31 = vadd.f32 %v619_v29, %v618_v28 }
 0x201   :  { %v314_v32 = vadd.f32 %v620_v31, %v562_v25  ;;  %v317_v33 = vmax.f32 %v311_v30, 0.0 }
 0x203   :  { %v318_v34 = vmax.f32 %v314_v32, 0.0 }
 0x205   :  { %v319_v36 = vpack.c.bf16 %v318_v34, %v317_v33 }
 0x207   :  { %652 = vmatpush3.bf16.msra.mxu0 %v319_v36 }
 0x208   :  { %623 = vmatprep.subr.bf16.mxu0 %v686_v35 }
 0x20a   :  { %654 = vmatmul.mubr.msk.bf16.vlgmr.msra.gmra.mrb[0].mxu0 %vm95_vm1, %v669_v2 }
 0x20b   :  { %624 = vmatpush3.bf16.msra.mxu0 %v687_v37 }
 0x20c   :  { %625 = vmatprep.subr.bf16.mxu0 %v688_v38 }
 0x20f   :  { %626 = vmatpush3.bf16.msra.mxu0 %v689_v39 }
 0x210   :  { %627 = vmatprep.subr.bf16.mxu0 %v690_v40 }
 0x213   :  { %628 = vmatpush3.bf16.msra.mxu0 %v691_v41 }
 0x214   :  { %629 = vmatprep.subr.bf16.mxu0 %v692_v42 }
 0x217   :  { %630 = vmatpush3.bf16.msra.mxu0 %v693_v43 }
 0x218   :  { %631 = vmatprep.subr.bf16.mxu0 %v694_v44 }
 0x21b   :  { %632 = vmatpush3.bf16.msra.mxu0 %v695_v45 }
 0x21c   :  { %633 = vmatprep.subr.bf16.mxu0 %v696_v46 }
 0x21f   :  { %634 = vmatpush3.bf16.msra.mxu0 %v697_v47 }
 0x220   :  { %635 = vmatprep.subr.bf16.mxu0 %v698_v48 }
 0x223   :  { %636 = vmatpush3.bf16.msra.mxu0 %v699_v49 }
 0x224   :  { %637 = vmatprep.subr.bf16.mxu0 %v700_v50 }
 0x227   :  { %638 = vmatpush3.bf16.msra.mxu0 %v701_v51 }
 0x2dd   :  { %v354_v52 = vpop.f32.mrb[0].mxu0 }
 0x2de   :  { %v655_v53 = vpop.f32.mrb[1].mxu0 }
 0x2df   :  { %v357_v54 = vpop.f32.mrb[2].mxu0 }
 0x2e0   :  { %v361_v55 = vpack.c.bf16 %v357_v54, %v354_v52  ;;  %v656_v56 = vpop.f32.mrb[3].mxu0 }
 0x2e2   :  { %529 = vmatprep.mubr.bf16.mxu0 %v361_v55 }
 0x2e3   :  { %530 = vmatmul.mubr.bf16.vlgmr.msra.gmra.mrb[4].mxu0 %v319_v36 }
 0x3b6   :  { %v639_v57 = vpop.f32.mrb[4].mxu0 }
 0x3b7   :  { %v640_v59 = vpop.f32.mrb[5].mxu0 }
 0x3b8   :  { %v641_v60 = vadd.f32 %v640_v59, %v639_v57  ;;  %v642_v61 = vpop.f32.mrb[6].mxu0 }
 0x3b9   :  { %v643_v62 = vpop.f32.mrb[7].mxu0 }
 0x3ba   :  { %v532_v63 = vadd.f32 %v641_v60, %v580_v58  ;;  %v644_v0 = vadd.f32 %v643_v62, %v642_v61 }
 0x3bc   :  { %538 = vst [vmem:[#allocation10] sm:$0xff] %v532_v63  ;;  %v535_v1 = vadd.f32 %v644_v0, %v580_v58 }
 0x3be   :  { %539 = vst [vmem:[#allocation10 + $0x8] sm:$0xff] %v535_v1 }
 0x3bf   :  { %801 = shalt.err (!%p798_p8)
}
 0x3c0   :  { %s802_s26 = scalar_lea.hbm %s966_s6, 256 }
 0x3c1   :  { %p803_p9 = scmp.ne.s32.totalorder %s966_s6, %s802_s26  ;;  %p806_p10 = scmp.lt.u32.totalorder %s802_s26, %s966_s6 }
 0x3c3   :  { %p808_p11 = pnand %p806_p10, %p803_p9 }
 0x3c5   :  { %811 = shalt.err (!%p808_p11)
}
 0x3c6   :  { %s829_s7 = smov 128   ;;  %s830_s8 = smov 8  }
 0x3c7   :  { %551 = dma.vmem_to_hbm [thread:$0]  %s546_s22, 256, %s966_s6, [#allocation4], %s829_s7, %s829_s7, %s830_s8  }
 0x3c8   :  { %818 = dma.done.wait [#allocation4], 256  }
 0x3c9   :  { %819 = vsyncadd [#allocation4], 4294967040 }
 0x3ca   :  { %555 = vsyncpa [#allocation3], 1 }
 0x3cb   :  { %556 = vsyncpa [#allocation6], 1 }
 0x3cc   :  { %557 = vsyncpa [#allocation9], 1 }
 0x3cd   :  { %558 = vsyncpa [#allocation4], 1 }

</bundles_post_ra>
